<compile_context>
chip_gen: v5e
topology: v5e:2x2
jax: 0.10.0
libtpu: 0.0.40
codegen_flags: <defaults>
</compile_context>

<pallas_src>
import functools

import jax
import jax.numpy as jnp
from jax.experimental import pallas as pl
from jax.experimental.pallas import tpu as pltpu

_LANE = 128


def _head_kernel(x_ref, w1_ref, b1_ref, w2_ref, b2_ref, out_ref):
    # dense: x @ W1  (MXU, f32 accumulate)
    h = jnp.dot(x_ref[...], w1_ref[...], preferred_element_type=jnp.float32)
    # bias add + tanh in f32 (VPU/EUP)
    h = jnp.tanh(h + b1_ref[...])
    # out_proj: cast only the matmul operand to the weight dtype; the f32
    # accumulator path (bias add) stays in f32.
    o = jnp.dot(h.astype(w2_ref.dtype), w2_ref[...],
                preferred_element_type=jnp.float32)
    out_ref[...] = (o + b2_ref[...]).astype(out_ref.dtype)


@functools.partial(
    jax.jit,
    static_argnames=("clone_detection", "compute_dtype", "out_dtype", "block_m"))
def classification_head(x, w1, b1, w2, b2, *, clone_detection=False,
                        compute_dtype=jnp.bfloat16, out_dtype=jnp.float32,
                        block_m=256):
    """Fused dense -> tanh -> out_proj head.

    x:  [N, in_features]      (if clone_detection, reshaped to [N/2, 2*in])
    w1: [in_features, hidden] b1: [hidden] or [1, hidden]
    w2: [hidden, num_labels]  b2: [num_labels] or [1, num_labels]
    """
    if clone_detection:
        # torch: _x.reshape(-1, _x.size(-1) * 2)
        x = x.reshape(-1, x.shape[-1] * 2)

    n, d_in = x.shape
    hidden = w1.shape[1]
    num_labels = w2.shape[1]

    # Optional low-precision matmul operands (memory-bound head); biases and
    # the accumulate / tanh path stay in f32.
    if compute_dtype is not None:
        x = x.astype(compute_dtype)
        w1 = w1.astype(compute_dtype)
        w2 = w2.astype(compute_dtype)
    b1 = b1.reshape(1, -1).astype(jnp.float32)
    b2 = b2.reshape(1, -1).astype(jnp.float32)

    # Lane-pad the (tiny) label dimension to a multiple of 128 so the second
    # matmul result and the output stores are lane-dense (no vst.msk).
    nl_pad = ((num_labels + _LANE - 1) // _LANE) * _LANE
    if nl_pad != num_labels:
        w2 = jnp.pad(w2, ((0, 0), (0, nl_pad - num_labels)))
        b2 = jnp.pad(b2, ((0, 0), (0, nl_pad - num_labels)))

    # Tile the batch axis; pad rows up to a multiple of the tile.
    tm = block_m if n >= block_m else max(8, -(-n // 8) * 8)
    n_pad = -(-n // tm) * tm
    if n_pad != n:
        x = jnp.pad(x, ((0, n_pad - n), (0, 0)))

    grid = (n_pad // tm,)

    # Advisory cost estimate so XLA can schedule neighbors around this call.
    in_bytes = (n_pad * d_in * jnp.dtype(x.dtype).itemsize
                + d_in * hidden * jnp.dtype(w1.dtype).itemsize
                + hidden * nl_pad * jnp.dtype(w2.dtype).itemsize
                + (hidden + nl_pad) * 4)
    out_bytes = n_pad * nl_pad * jnp.dtype(out_dtype).itemsize
    cost = pl.CostEstimate(
        flops=2 * n_pad * (d_in * hidden + hidden * nl_pad),
        transcendentals=n_pad * hidden,
        bytes_accessed=in_bytes + out_bytes)

    out = pl.pallas_call(
        _head_kernel,
        out_shape=jax.ShapeDtypeStruct((n_pad, nl_pad), out_dtype),
        grid=grid,
        in_specs=[
            pl.BlockSpec((tm, d_in), lambda i: (i, 0)),       # x tile (pipelined)
            pl.BlockSpec((d_in, hidden), lambda i: (0, 0)),   # w1 (resident)
            pl.BlockSpec((1, hidden), lambda i: (0, 0)),      # b1 (resident)
            pl.BlockSpec((hidden, nl_pad), lambda i: (0, 0)),  # w2 (resident)
            pl.BlockSpec((1, nl_pad), lambda i: (0, 0)),      # b2 (resident)
        ],
        out_specs=pl.BlockSpec((tm, nl_pad), lambda i: (i, 0)),
        compiler_params=pltpu.CompilerParams(
            dimension_semantics=("parallel",),
            vmem_limit_bytes=32 * 1024 * 1024),
        cost_estimate=cost,
    )(x, w1, b1, w2, b2)

    # Drop row padding and label-lane padding.
    return out[:n, :num_labels]


def _reference(x, w1, b1, w2, b2, *, clone_detection=False, compute_dtype=None):
    if clone_detection:
        x = x.reshape(-1, x.shape[-1] * 2)
    if compute_dtype is not None:
        x = x.astype(compute_dtype)
        w1 = w1.astype(compute_dtype)
        w2 = w2.astype(compute_dtype)
    h = jnp.dot(x, w1, preferred_element_type=jnp.float32)
    h = jnp.tanh(h + b1.reshape(1, -1).astype(jnp.float32))
    o = jnp.dot(h.astype(w2.dtype), w2, preferred_element_type=jnp.float32)
    return o + b2.reshape(1, -1).astype(jnp.float32)


if __name__ == "__main__":
    # Small shapes consistent with the module (task_type != 'clone_detection'):
    # batch=8, hidden_size=32, num_labels=4.
    batch, hidden, num_labels = 8, 32, 4

    key = jax.random.PRNGKey(0)
    kx, kw1, kb1, kw2, kb2 = jax.random.split(key, 5)

    x = jax.random.normal(kx, (batch, hidden), dtype=jnp.float32)
    # Deterministic synthetic parameter init (shapes match the nn.Linear layers,
    # stored pre-transposed as [in, out]).
    w1 = jax.random.normal(kw1, (hidden, hidden), dtype=jnp.float32) * 0.05
    b1 = jax.random.normal(kb1, (1, hidden), dtype=jnp.float32) * 0.01
    w2 = jax.random.normal(kw2, (hidden, num_labels), dtype=jnp.float32) * 0.05
    b2 = jax.random.normal(kb2, (1, num_labels), dtype=jnp.float32) * 0.01

    # 1) Full-precision path: exact vs f32 reference.
    out_f32 = classification_head(x, w1, b1, w2, b2, clone_detection=False,
                                  compute_dtype=None)
    out_f32 = jax.block_until_ready(out_f32)
    ref_f32 = _reference(x, w1, b1, w2, b2, clone_detection=False)
    assert out_f32.shape == (batch, num_labels)
    assert out_f32.dtype == jnp.float32
    assert jnp.allclose(out_f32, ref_f32, atol=1e-5, rtol=1e-5), "f32 mismatch"

    # 2) Default bf16-operand path: compare against a bf16-operand reference.
    out_bf16 = classification_head(x, w1, b1, w2, b2, clone_detection=False)
    out_bf16 = jax.block_until_ready(out_bf16)
    ref_bf16 = _reference(x, w1, b1, w2, b2, clone_detection=False,
                          compute_dtype=jnp.bfloat16)
    assert jnp.allclose(out_bf16, ref_bf16, atol=2e-3, rtol=2e-3), "bf16 mismatch"
    assert jnp.allclose(out_bf16, ref_f32, atol=5e-2, rtol=5e-2), "bf16 drift"

    # 3) clone_detection branch: input [2*batch, hidden] pairs, dense takes
    #    2*hidden features.
    kw1c = jax.random.fold_in(kw1, 1)
    w1c = jax.random.normal(kw1c, (2 * hidden, hidden), dtype=jnp.float32) * 0.05
    xc = jax.random.normal(jax.random.fold_in(kx, 1), (2 * batch, hidden),
                           dtype=jnp.float32)
    out_c = classification_head(xc, w1c, b1, w2, b2, clone_detection=True,
                                compute_dtype=None)
    out_c = jax.block_until_ready(out_c)
    ref_c = _reference(xc, w1c, b1, w2, b2, clone_detection=True)
    assert out_c.shape == (batch, num_labels)
    assert jnp.allclose(out_c, ref_c, atol=1e-5, rtol=1e-5), "clone mismatch"

    print("KERNEL_OK")
</pallas_src>

<mosaic_0001>
module attributes {stable_mosaic.version = 11 : i64} {
  func.func @_head_kernel(%arg0: i32, %arg1: memref<8x32xf32, #tpu.memory_space<vmem>>, %arg2: memref<32x32xf32, #tpu.memory_space<vmem>>, %arg3: memref<1x32xf32, #tpu.memory_space<vmem>>, %arg4: memref<32x128xf32, #tpu.memory_space<vmem>>, %arg5: memref<1x128xf32, #tpu.memory_space<vmem>>, %arg6: memref<8x128xf32, #tpu.memory_space<vmem>>) attributes {dimension_semantics = [#tpu.dimension_semantics<parallel>], iteration_bounds = array<i64: 1>, scalar_prefetch = 0 : i64, scratch_operands = 0 : i64, tpu.core_type = #tpu.core_type<tc>, window_params = [{transform_indices = @transform_0, window_bounds = array<i64: 8, 32>}, {pipeline_mode = #tpu.pipeline_mode<synchronous>, transform_indices = @transform_1, window_bounds = array<i64: 32, 32>}, {pipeline_mode = #tpu.pipeline_mode<synchronous>, transform_indices = @transform_2, window_bounds = array<i64: 1, 32>}, {pipeline_mode = #tpu.pipeline_mode<synchronous>, transform_indices = @transform_3, window_bounds = array<i64: 32, 128>}, {pipeline_mode = #tpu.pipeline_mode<synchronous>, transform_indices = @transform_4, window_bounds = array<i64: 1, 128>}, {transform_indices = @transform_5, window_bounds = array<i64: 8, 128>}]} {
    %c0 = arith.constant 0 : index
    %c0_0 = arith.constant 0 : index
    %0 = vector.load %arg1[%c0, %c0_0] : memref<8x32xf32, #tpu.memory_space<vmem>>, vector<8x32xf32>
    %c0_1 = arith.constant 0 : index
    %c0_2 = arith.constant 0 : index
    %1 = vector.load %arg2[%c0_1, %c0_2] : memref<32x32xf32, #tpu.memory_space<vmem>>, vector<32x32xf32>
    %cst = arith.constant dense<0.000000e+00> : vector<8x32xf32>
    %2 = tpu.matmul %0, %1, %cst {dimension_numbers = #tpu.dot_dimension_numbers<[1], [0], [0], [1], [0, 0, 1, 1], [], []>} : vector<8x32xf32>, vector<32x32xf32>, vector<8x32xf32> -> vector<8x32xf32>
    %c0_3 = arith.constant 0 : index
    %c0_4 = arith.constant 0 : index
    %3 = vector.load %arg3[%c0_3, %c0_4] : memref<1x32xf32, #tpu.memory_space<vmem>>, vector<1x32xf32>
    %4 = vector.broadcast %3 : vector<1x32xf32> to vector<8x32xf32>
    %5 = arith.addf %2, %4 : vector<8x32xf32>
    %6 = math.tanh %5 : vector<8x32xf32>
    %c0_5 = arith.constant 0 : index
    %c0_6 = arith.constant 0 : index
    %7 = vector.load %arg4[%c0_5, %c0_6] : memref<32x128xf32, #tpu.memory_space<vmem>>, vector<32x128xf32>
    %cst_7 = arith.constant dense<0.000000e+00> : vector<8x128xf32>
    %8 = tpu.matmul %6, %7, %cst_7 {dimension_numbers = #tpu.dot_dimension_numbers<[1], [0], [0], [1], [0, 0, 1, 1], [], []>} : vector<8x32xf32>, vector<32x128xf32>, vector<8x128xf32> -> vector<8x128xf32>
    %c0_8 = arith.constant 0 : index
    %c0_9 = arith.constant 0 : index
    %9 = vector.load %arg5[%c0_8, %c0_9] : memref<1x128xf32, #tpu.memory_space<vmem>>, vector<1x128xf32>
    %10 = vector.broadcast %9 : vector<1x128xf32> to vector<8x128xf32>
    %11 = arith.addf %8, %10 : vector<8x128xf32>
    %c0_10 = arith.constant 0 : index
    %c0_11 = arith.constant 0 : index
    %12 = vector.load %arg6[%c0_10, %c0_11] : memref<8x128xf32, #tpu.memory_space<vmem>>, vector<8x128xf32>
    tpu.vector_store %arg6[%c0_10, %c0_11], %11 {strides = array<i32>} : memref<8x128xf32, #tpu.memory_space<vmem>>, vector<8x128xf32>,
    return
  }
  func.func @transform_0(%arg0: i32) -> (i32, i32) {
    %c0_i32 = arith.constant 0 : i32
    %c0_i32_0 = arith.constant 0 : i32
    return %arg0, %c0_i32 : i32, i32
  }
  func.func @transform_1(%arg0: i32) -> (i32, i32) {
    %c0_i32 = arith.constant 0 : i32
    %c0_i32_0 = arith.constant 0 : i32
    %c0_i32_1 = arith.constant 0 : i32
    return %c0_i32, %c0_i32_0 : i32, i32
  }
  func.func @transform_2(%arg0: i32) -> (i32, i32) {
    %c0_i32 = arith.constant 0 : i32
    %c0_i32_0 = arith.constant 0 : i32
    %c0_i32_1 = arith.constant 0 : i32
    return %c0_i32, %c0_i32_0 : i32, i32
  }
  func.func @transform_3(%arg0: i32) -> (i32, i32) {
    %c0_i32 = arith.constant 0 : i32
    %c0_i32_0 = arith.constant 0 : i32
    %c0_i32_1 = arith.constant 0 : i32
    return %c0_i32, %c0_i32_0 : i32, i32
  }
  func.func @transform_4(%arg0: i32) -> (i32, i32) {
    %c0_i32 = arith.constant 0 : i32
    %c0_i32_0 = arith.constant 0 : i32
    %c0_i32_1 = arith.constant 0 : i32
    return %c0_i32, %c0_i32_0 : i32, i32
  }
  func.func @transform_5(%arg0: i32) -> (i32, i32) {
    %c0_i32 = arith.constant 0 : i32
    %c0_i32_0 = arith.constant 0 : i32
    return %arg0, %c0_i32 : i32, i32
  }
}

</mosaic_0001>

<bundles_post_ra>
// kernel: classification_head.1
= control target key start
LH: loop header
LB: loop body
LE: loop exit
PB: predicated region body
PF: predicated region fallthrough
CT: control target
= control target key end

     0   :  { %vm29_vm0 = vcmask 261120   ;;  %s164_s1 = inlined_call_operand.vmem [shape: f32[32,32], index: 1, kind: input, shape index: {}]   ;;  %s165_s2 = inlined_call_operand.vmem [shape: f32[1,32], index: 2, kind: input, shape index: {}]   ;;  %s166_s0 = inlined_call_operand.vmem [shape: f32[8,32], index: 0, kind: input, shape index: {}]   ;;  %s167_s4 = inlined_call_operand.vmem [shape: f32[1,128], index: 4, kind: input, shape index: {}]   ;;  %s168_s3 = inlined_call_operand.vmem [shape: f32[32,128], index: 3, kind: input, shape index: {}]   ;;  %s169_s5 = inlined_call_operand.vmem [shape: f32[8,128], index: 5, kind: output, shape index: {}]  }
   0x1   :  { %v24_v0 = vld [vmem:[%s164_s1 + $0x18] sm:$0xff]  ;;  %v23_v1 = vld [vmem:[%s164_s1 + $0x10] sm:$0xff]  ;;  %v22_v2 = vld [vmem:[%s164_s1 + $0x8] sm:$0xff] }
   0x2   :  { %45 = vmatpush.msra.mxu0 %v24_v0  ;;  %v21_v3 = vld [vmem:[%s164_s1] sm:$0xff]  ;;  %v57_v5 = vld [vmem:[%s168_s3 + $0x18] sm:$0xff]  ;;  %v56_v6 = vld [vmem:[%s168_s3 + $0x10] sm:$0xff] }
   0x3   :  { %v20_v4 = vld [vmem:[%s166_s0] sm:$0xff]  ;;  %77 = vmatpush.msra.mxu1 %v57_v5  ;;  %v55_v7 = vld [vmem:[%s168_s3 + $0x8] sm:$0xff] }
   0x4   :  { %46 = vmatpush.msra.mxu0 %v23_v1  ;;  %v54_v8 = vld [vmem:[%s168_s3] sm:$0xff] }
   0x5   :  { %78 = vmatpush.msra.mxu1 %v56_v6  ;;  %v92_v9 = vld [vmem:[%s165_s2] ss:$0 sm:$0xff] }
   0x6   :  { %47 = vmatpush.msra.mxu0 %v22_v2  ;;  %v93_v13 = vld [vmem:[%s167_s4] ss:$0 sm:$0xff] }
   0x7   :  { %79 = vmatpush.msra.mxu1 %v55_v7 }
   0x8   :  { %48 = vmatpush.msra.mxu0 %v21_v3 }
   0x9   :  { %90 = vmatmul.msk.f32.vlgmr.msra.gmra.mxu0 %vm29_vm0, %v20_v4  ;;  %80 = vmatpush.msra.mxu1 %v54_v8 }
  0x86   :  { %v50_v10 = vpop.f32.mrf.mxu0 }
  0x87   :  { %v51_v11 = vadd.f32 %v92_v9, %v50_v10 }
  0x89   :  { %94 = vtanh.f32 %v51_v11 }
  0x8f   :  { %v95_v12 = vpop.eup %94 }
  0x90   :  { %91 = vmatmul.msk.f32.vlgmr.msra.gmra.mxu1 %vm29_vm0, %v95_v12 }
 0x10d   :  { %v82_v14 = vpop.f32.mrf.mxu1 }
 0x10e   :  { %v83_v15 = vadd.f32 %v93_v13, %v82_v14 }
 0x110   :  { %85 = vst [vmem:[%s169_s5] sm:$0xff] %v83_v15 }

</bundles_post_ra>
